<compile_context>
chip_gen: v7x
topology: tpu7x:2x2x1
jax: 0.10.0
libtpu: 0.0.40
codegen_flags: <defaults>
</compile_context>

<pallas_src>
import math
import jax
import jax.numpy as jnp
from jax import lax
from jax.experimental import pallas as pl
from jax.experimental.pallas import tpu as pltpu


_VMEM_LIMIT_BYTES = 64 * 1024 * 1024   # headroom over the 16/32 MiB scoped defaults
_RESIDENT_BYTES = 6 * 1024 * 1024      # keep a full operand VMEM-resident if <= this
_X_TILE_BYTES = 4 * 1024 * 1024        # max bf16 bytes for a (tn, F_pad) x tile
_OUT_TILE_BYTES = 4 * 1024 * 1024      # max f32 bytes for a (tn, C_pad) out/acc tile


def _round_up(x, m):
    return ((x + m - 1) // m) * m


def _pick_tile(dim, cap, mult=128):
    """Largest multiple of `mult` that divides `dim` and is <= cap (>= mult)."""
    cap = max(mult, min(cap, dim))
    t = cap - (cap % mult)
    while dim % t:
        t -= mult
    return t


def _pad_cast(a, shape, dtype):
    """Cast to `dtype`; zero-pad to `shape` only if the shape actually differs."""
    a = a.astype(dtype)
    if a.shape == shape:
        return a
    buf = jnp.zeros(shape, dtype)
    return buf.at[: a.shape[0], : a.shape[1]].set(a)


# --------------------------------------------------------------------------
# Stage 1: support = x @ W^T + b     (W kept in (out, in) layout, no transpose)
# --------------------------------------------------------------------------

def _linear_resident_kernel(x_ref, w_ref, b_ref, o_ref):
    # x_ref: (tn, F_pad) bf16, w_ref: (C_pad, F_pad) bf16 (VMEM-resident),
    # b_ref: (1, C_pad) f32, o_ref: (tn, C_pad) bf16.
    acc = lax.dot_general(
        x_ref[...], w_ref[...],
        dimension_numbers=(((1,), (1,)), ((), ())),   # x @ W^T on the MXU
        preferred_element_type=jnp.float32,
    )
    o_ref[...] = (acc + b_ref[...]).astype(o_ref.dtype)


def _linear_tiled_kernel(x_ref, w_ref, b_ref, o_ref, acc_ref):
    # K-tiled fallback for large F/C: f32 scratch accumulator across k.
    k = pl.program_id(1)

    @pl.when(k == 0)
    def _():
        acc_ref[...] = jnp.zeros_like(acc_ref)

    acc_ref[...] += lax.dot_general(
        x_ref[...], w_ref[...],
        dimension_numbers=(((1,), (1,)), ((), ())),
        preferred_element_type=jnp.float32,
    )

    @pl.when(k == pl.num_programs(1) - 1)
    def _():
        o_ref[...] = (acc_ref[...] + b_ref[...]).astype(o_ref.dtype)


# --------------------------------------------------------------------------
# Stage 2: output = adj @ support   (f32 output block doubles as accumulator)
# --------------------------------------------------------------------------

def _spmm_resident_kernel(a_ref, s_ref, o_ref):
    # a_ref: (tn, tk) bf16 adj tile, s_ref: (N_pad, C_pad) bf16 (VMEM-resident),
    # o_ref: (tn, C_pad) f32 (constant index across k -> acts as accumulator).
    k = pl.program_id(1)
    tk = a_ref.shape[1]

    @pl.when(k == 0)
    def _():
        o_ref[...] = jnp.zeros_like(o_ref)

    start = pl.multiple_of(k * tk, 128)
    o_ref[...] += jnp.dot(a_ref[...], s_ref[pl.ds(start, tk), :],
                          preferred_element_type=jnp.float32)


def _spmm_tiled_kernel(a_ref, s_ref, o_ref):
    # Fallback when the support matrix does not fit VMEM: stream (tk, C_pad).
    k = pl.program_id(1)

    @pl.when(k == 0)
    def _():
        o_ref[...] = jnp.zeros_like(o_ref)

    o_ref[...] += jnp.dot(a_ref[...], s_ref[...],
                          preferred_element_type=jnp.float32)


# --------------------------------------------------------------------------
# Wrapper
# --------------------------------------------------------------------------

def graph_convolution_forward(x, adj, weight, bias=None,
                              *, row_tile_cap=512, k_tile_cap=512):
    """GraphConvolution forward: adj @ (x @ weight.T + bias).

    x:      (N, in_features)
    adj:    (N, N) dense adjacency (torch.spmm realized as a dense matmul)
    weight: (out_features, in_features)  -- PyTorch nn.Linear layout
    bias:   (out_features,) or None
    """
    N, F = x.shape
    C = weight.shape[0]
    out_dtype = x.dtype
    cdt = jnp.bfloat16          # MXU operand dtype (accumulation stays f32)

    N_pad = _round_up(N, 128)
    F_pad = _round_up(F, 128)
    C_pad = _round_up(C, 128)

    # bf16 cast (+ zero pad only when needed). Padded x rows are zero, padded
    # weight rows are zero, padded adj rows/cols are zero.
    xp = _pad_cast(x, (N_pad, F_pad), cdt)
    wp = _pad_cast(weight, (C_pad, F_pad), cdt)
    ap = _pad_cast(adj, (N_pad, N_pad), cdt)
    bp = jnp.zeros((1, C_pad), jnp.float32)
    if bias is not None:
        bp = bp.at[0, :C].set(bias.astype(jnp.float32))

    # --- tile plan -----------------------------------------------------------
    row_cap = row_tile_cap
    if N_pad >= 2 * 128:
        # Keep >= 2 row tiles so the "parallel" row axis feeds both v7x TCs.
        row_cap = min(row_cap, N_pad // 2)
    # Keep the (tn, C_pad) f32 output/accumulator block small (v7x: 64 MiB VMEM).
    max_tn_for_c = max(128, ((_OUT_TILE_BYTES // (C_pad * 4)) // 128) * 128)
    row_cap = min(row_cap, max_tn_for_c)

    tn = _pick_tile(N_pad, row_cap)        # output-row tile (parallel axis)
    tf = _pick_tile(F_pad, k_tile_cap)     # K tile over in_features
    tk = _pick_tile(N_pad, k_tile_cap)     # K tile over nodes (spmm contraction)

    w_resident = (C_pad * F_pad * 2 <= _RESIDENT_BYTES
                  and tn * F_pad * 2 <= _X_TILE_BYTES)
    s_resident = (N_pad * C_pad * 2 <= _RESIDENT_BYTES)
    # TODO(synk): for very large out_features a C grid axis (tiling C_pad)
    # would be needed to keep the non-resident fallbacks within v7x VMEM.

    cparams_1d = pltpu.CompilerParams(
        dimension_semantics=("parallel",),
        vmem_limit_bytes=_VMEM_LIMIT_BYTES)
    cparams_2d = pltpu.CompilerParams(
        dimension_semantics=("parallel", "arbitrary"),
        vmem_limit_bytes=_VMEM_LIMIT_BYTES)

    # --- stage 1: support = x @ W^T + b   -> bf16 (N_pad, C_pad) -------------
    support_shape = jax.ShapeDtypeStruct((N_pad, C_pad), cdt)

    if w_resident:
        support = pl.pallas_call(
            _linear_resident_kernel,
            out_shape=support_shape,
            grid_spec=pltpu.PrefetchScalarGridSpec(
                num_scalar_prefetch=0,
                grid=(N_pad // tn,),
                in_specs=[
                    pl.BlockSpec((tn, F_pad), lambda i: (i, 0)),
                    pl.BlockSpec((C_pad, F_pad), lambda i: (0, 0)),  # resident
                    pl.BlockSpec((1, C_pad), lambda i: (0, 0)),
                ],
                out_specs=pl.BlockSpec((tn, C_pad), lambda i: (i, 0)),
            ),
            compiler_params=cparams_1d,
        )(xp, wp, bp)
    else:
        support = pl.pallas_call(
            _linear_tiled_kernel,
            out_shape=support_shape,
            grid_spec=pltpu.PrefetchScalarGridSpec(
                num_scalar_prefetch=0,
                grid=(N_pad // tn, F_pad // tf),
                in_specs=[
                    pl.BlockSpec((tn, tf), lambda i, k: (i, k)),
                    pl.BlockSpec((C_pad, tf), lambda i, k: (0, k)),
                    pl.BlockSpec((1, C_pad), lambda i, k: (0, 0)),
                ],
                out_specs=pl.BlockSpec((tn, C_pad), lambda i, k: (i, 0)),
                scratch_shapes=[pltpu.VMEM((tn, C_pad), jnp.float32)],
            ),
            compiler_params=cparams_2d,
        )(xp, wp, bp)

    # --- stage 2: output = adj @ support  -> f32 (N_pad, C_pad) --------------
    out_shape = jax.ShapeDtypeStruct((N_pad, C_pad), jnp.float32)

    if s_resident:
        out_pad = pl.pallas_call(
            _spmm_resident_kernel,
            out_shape=out_shape,
            grid_spec=pltpu.PrefetchScalarGridSpec(
                num_scalar_prefetch=0,
                grid=(N_pad // tn, N_pad // tk),
                in_specs=[
                    pl.BlockSpec((tn, tk), lambda i, k: (i, k)),
                    pl.BlockSpec((N_pad, C_pad), lambda i, k: (0, 0)),  # resident
                ],
                out_specs=pl.BlockSpec((tn, C_pad), lambda i, k: (i, 0)),
            ),
            compiler_params=cparams_2d,
        )(ap, support)
    else:
        out_pad = pl.pallas_call(
            _spmm_tiled_kernel,
            out_shape=out_shape,
            grid_spec=pltpu.PrefetchScalarGridSpec(
                num_scalar_prefetch=0,
                grid=(N_pad // tn, N_pad // tk),
                in_specs=[
                    pl.BlockSpec((tn, tk), lambda i, k: (i, k)),
                    pl.BlockSpec((tk, C_pad), lambda i, k: (k, 0)),
                ],
                out_specs=pl.BlockSpec((tn, C_pad), lambda i, k: (i, 0)),
            ),
            compiler_params=cparams_2d,
        )(ap, support)

    return out_pad[:N, :C].astype(out_dtype)


def init_gcn_params(key, in_features, out_features, dtype=jnp.float32):
    # Mirrors GraphConvolution.init(): W.weight ~ U(-stdv, stdv), stdv = 1/sqrt(in).
    kw, kb = jax.random.split(key)
    stdv = 1.0 / math.sqrt(in_features)
    weight = jax.random.uniform(kw, (out_features, in_features), dtype, -stdv, stdv)
    bias = jax.random.uniform(kb, (out_features,), dtype, -stdv, stdv)
    return weight, bias


if __name__ == "__main__":
    key = jax.random.PRNGKey(0)
    k_x, k_a, k_p = jax.random.split(key, 3)

    # Small shapes: 64 nodes, 32 input features, 8 output classes.
    N, in_features, out_features = 64, 32, 8

    x = jax.random.normal(k_x, (N, in_features), dtype=jnp.float32)

    # Deterministic dense row-normalized adjacency.
    # TODO(synk): sparse (CSR/COO) adjacency spmm is realized as a dense matmul.
    a_rand = (jax.random.uniform(k_a, (N, N)) < 0.1).astype(jnp.float32)
    a_sym = jnp.maximum(a_rand, a_rand.T) + jnp.eye(N, dtype=jnp.float32)
    adj = a_sym / jnp.sum(a_sym, axis=1, keepdims=True)

    weight, bias = init_gcn_params(k_p, in_features, out_features)

    y = graph_convolution_forward(x, adj, weight, bias)
    y = jax.block_until_ready(y)

    # Reference: same math as GraphConvolution.forward with dense adj (f32).
    y_ref = adj @ (x @ weight.T + bias)
    assert y.shape == (N, out_features)
    # bf16 MXU operands + bf16 intermediate -> loosened tolerance vs f32 ref.
    assert jnp.allclose(y, y_ref, atol=5e-2, rtol=5e-2), \
        float(jnp.max(jnp.abs(y - y_ref)))

    print("KERNEL_OK")
</pallas_src>

<mosaic_0001>
module attributes {stable_mosaic.version = 11 : i64} {
  func.func @_linear_resident_kernel(%arg0: i32, %arg1: memref<128x128xbf16, #tpu.memory_space<vmem>>, %arg2: memref<128x128xbf16, #tpu.memory_space<vmem>>, %arg3: memref<1x128xf32, #tpu.memory_space<vmem>>, %arg4: memref<128x128xbf16, #tpu.memory_space<vmem>>) attributes {dimension_semantics = [#tpu.dimension_semantics<parallel>], iteration_bounds = array<i64: 1>, scalar_prefetch = 0 : i64, scratch_operands = 0 : i64, tpu.core_type = #tpu.core_type<tc>, window_params = [{transform_indices = @transform_0, window_bounds = array<i64: 128, 128>}, {pipeline_mode = #tpu.pipeline_mode<synchronous>, transform_indices = @transform_1, window_bounds = array<i64: 128, 128>}, {pipeline_mode = #tpu.pipeline_mode<synchronous>, transform_indices = @transform_2, window_bounds = array<i64: 1, 128>}, {transform_indices = @transform_3, window_bounds = array<i64: 128, 128>}]} {
    %c0 = arith.constant 0 : index
    %c0_0 = arith.constant 0 : index
    %0 = vector.load %arg1[%c0, %c0_0] : memref<128x128xbf16, #tpu.memory_space<vmem>>, vector<128x128xbf16>
    %c0_1 = arith.constant 0 : index
    %c0_2 = arith.constant 0 : index
    %1 = vector.load %arg2[%c0_1, %c0_2] : memref<128x128xbf16, #tpu.memory_space<vmem>>, vector<128x128xbf16>
    %cst = arith.constant dense<0.000000e+00> : vector<128x128xf32>
    %2 = tpu.matmul %0, %1, %cst {dimension_numbers = #tpu.dot_dimension_numbers<[1], [1], [0], [0], [0, 0, 1, 0], [], []>} : vector<128x128xbf16>, vector<128x128xbf16>, vector<128x128xf32> -> vector<128x128xf32>
    %c0_3 = arith.constant 0 : index
    %c0_4 = arith.constant 0 : index
    %3 = vector.load %arg3[%c0_3, %c0_4] : memref<1x128xf32, #tpu.memory_space<vmem>>, vector<1x128xf32>
    %4 = vector.broadcast %3 : vector<1x128xf32> to vector<128x128xf32>
    %5 = arith.addf %2, %4 : vector<128x128xf32>
    %6 = arith.truncf %5 : vector<128x128xf32> to vector<128x128xbf16>
    %c0_5 = arith.constant 0 : index
    %c0_6 = arith.constant 0 : index
    %7 = vector.load %arg4[%c0_5, %c0_6] : memref<128x128xbf16, #tpu.memory_space<vmem>>, vector<128x128xbf16>
    tpu.vector_store %arg4[%c0_5, %c0_6], %6 {strides = array<i32>} : memref<128x128xbf16, #tpu.memory_space<vmem>>, vector<128x128xbf16>,
    return
  }
  func.func @transform_0(%arg0: i32) -> (i32, i32) {
    %c0_i32 = arith.constant 0 : i32
    %c0_i32_0 = arith.constant 0 : i32
    return %arg0, %c0_i32 : i32, i32
  }
  func.func @transform_1(%arg0: i32) -> (i32, i32) {
    %c0_i32 = arith.constant 0 : i32
    %c0_i32_0 = arith.constant 0 : i32
    %c0_i32_1 = arith.constant 0 : i32
    return %c0_i32, %c0_i32_0 : i32, i32
  }
  func.func @transform_2(%arg0: i32) -> (i32, i32) {
    %c0_i32 = arith.constant 0 : i32
    %c0_i32_0 = arith.constant 0 : i32
    %c0_i32_1 = arith.constant 0 : i32
    return %c0_i32, %c0_i32_0 : i32, i32
  }
  func.func @transform_3(%arg0: i32) -> (i32, i32) {
    %c0_i32 = arith.constant 0 : i32
    %c0_i32_0 = arith.constant 0 : i32
    return %arg0, %c0_i32 : i32, i32
  }
}

</mosaic_0001>

<bundles_post_ra>
// kernel: tpu_custom_call.1
= control target key start
LH: loop header
LB: loop body
LE: loop exit
PB: predicated region body
PF: predicated region fallthrough
CT: control target
= control target key end

     0   :  { %8 = vsyncpa [#allocation3], 0  ;;  %s751_s0 = inlined_call_operand.hbm [shape: bf16[128,128], index: 0, kind: input, shape index: {}]   ;;  %s752_s1 = inlined_call_operand.hbm [shape: bf16[128,128], index: 1, kind: input, shape index: {}]   ;;  %s753_s2 = inlined_call_operand.hbm [shape: f32[1,128], index: 2, kind: input, shape index: {}]   ;;  %s754_s3 = inlined_call_operand.hbm [shape: bf16[128,128], index: 3, kind: output, shape index: {}]  }
   0x1   :  { %9 = vsyncpa [#allocation6], 0 }
   0x2   :  { %10 = vsyncpa [#allocation4], 0  ;;  %s661_s12 = smov [#allocation5]   ;;  %s662_s14 = smov [#allocation2]  }
   0x3   :  { %s28_s13 = sshll.u32 %s661_s12, 4  ;;  %s16_s15 = sshll.u32 %s662_s14, 4  ;;  %s29_s13 = int_to_ptr.vmem [resolvable:$true] %s28_s13  ;;  %s687_s15 = int_to_ptr.vmem [resolvable:$true] %s16_s15 }
   0x4   :  { %s567_s18 = scalar_lea.hbm %s752_s1, 1024 }
   0x5   :  { %p568_p0 = scmp.ne.s32.totalorder %s752_s1, %s567_s18  ;;  %p571_p1 = scmp.lt.u32.totalorder %s567_s18, %s752_s1 }
   0x7   :  { %p573_p2 = pnand %p571_p1, %p568_p0 }
   0x9   :  { %576 = shalt.err (!%p573_p2)
}
   0xa   :  { %s577_s23 = scalar_lea.vmem %s29_s13, 1024  ;;  %p582_p4 = scmp.lt.s32.totalorder %s29_s13, %s29_s13 }
   0xb   :  { %p578_p3 = scmp.ne.s32.totalorder %s29_s13, %s577_s23  ;;  %p583_p5 = scmp.lt.s32.totalorder %s577_s23, %s577_s23 }
   0xd   :  { %p584_p6 = por %p583_p5, %p582_p4 }
   0xf   :  { %p585_p7 = pnand %p584_p6, %p578_p3 }
  0x11   :  { %588 = shalt.err (!%p585_p7)
}
  0x12   :  { %s663_s24 = smov 64   ;;  %s664_s25 = smov 4  }
  0x13   :  { %34 = dma.hbm_to_vmem [thread:$0]  %s752_s1, 1024, %s29_s13, [#allocation6], %s663_s24, %s663_s24, %s664_s25  }
  0x14   :  { %s589_s30 = scalar_lea.hbm %s751_s0, 1024 }
  0x15   :  { %p590_p8 = scmp.ne.s32.totalorder %s751_s0, %s589_s30  ;;  %p593_p9 = scmp.lt.u32.totalorder %s589_s30, %s751_s0 }
  0x17   :  { %p595_p10 = pnand %p593_p9, %p590_p8 }
  0x19   :  { %598 = shalt.err (!%p595_p10)
}
  0x1a   :  { %s599_s8 = scalar_lea.vmem %s687_s15, 1024  ;;  %p604_p12 = scmp.lt.s32.totalorder %s687_s15, %s687_s15 }
  0x1b   :  { %p600_p11 = scmp.ne.s32.totalorder %s687_s15, %s599_s8  ;;  %p605_p13 = scmp.lt.s32.totalorder %s599_s8, %s599_s8 }
  0x1d   :  { %p606_p0 = por %p605_p13, %p604_p12 }
  0x1f   :  { %p607_p1 = pnand %p606_p0, %p600_p11 }
  0x21   :  { %610 = shalt.err (!%p607_p1)
}
  0x22   :  { %22 = dma.hbm_to_vmem [thread:$0]  %s751_s0, 1024, %s687_s15, [#allocation3], %s663_s24, %s663_s24, %s664_s25  }
  0x23   :  { %s665_s10 = smov [#allocation7]   ;;  %s611_s14 = scalar_lea.hbm %s753_s2, 16 }
  0x24   :  { %s41_s11 = sshll.u32 %s665_s10, 4  ;;  %p612_p2 = scmp.ne.s32.totalorder %s753_s2, %s611_s14  ;;  %s42_s11 = int_to_ptr.vmem [resolvable:$true] %s41_s11 }
  0x25   :  { %p615_p3 = scmp.lt.u32.totalorder %s611_s14, %s753_s2 }
  0x27   :  { %p617_p4 = pnand %p615_p3, %p612_p2 }
  0x29   :  { %620 = shalt.err (!%p617_p4)
}
  0x2a   :  { %s621_s20 = scalar_lea.vmem %s42_s11, 16  ;;  %s625_s0 = scalar_lea.vmem %s42_s11, 32 }
  0x2b   :  { %p622_p5 = scmp.ne.s32.totalorder %s42_s11, %s621_s20  ;;  %p626_p6 = scmp.lt.s32.totalorder %s42_s11, %s42_s11 }
  0x2c   :  { %p627_p7 = scmp.lt.s32.totalorder %s625_s0, %s621_s20 }
  0x2e   :  { %p628_p8 = por %p627_p7, %p626_p6 }
  0x30   :  { %p629_p9 = pnand %p628_p8, %p622_p5 }
  0x32   :  { %632 = shalt.err (!%p629_p9)
}
  0x33   :  { %44 = dma.hbm_to_vmem [thread:$0]  %s753_s2, 16, %s42_s11, [#allocation6]  }
  0x34   :  { %655 = dma.done.wait [#allocation3], 1024  }
  0x35   :  { %656 = vsyncadd [#allocation3], 4294966272 }
  0x36   :  { %657 = dma.done.wait [#allocation6], 1040  }
  0x37   :  { %658 = vsyncadd [#allocation6], 4294966256  ;;  %v551_v0 = vld [vmem:[#allocation5] sm:$0xff]   ;;  %v552_v1 = vld [vmem:[#allocation5 + $0x8] sm:$0xff]   ;;  %s666_s2 = smov [#allocation8]  }
  0x38   :  { %497 = vmatprep.subr.bf16.mxu0 %v551_v0  ;;  %529 = vmatprep.subr.bf16.mxu1 %v551_v0  ;;  %v553_v2 = vld [vmem:[#allocation5 + $0x10] sm:$0xff]   ;;  %v559_v3 = vld [vmem:[#allocation2] sm:$0xff]   ;;  %v554_v5 = vld [vmem:[#allocation5 + $0x18] sm:$0xff]   ;;  %s372_s22 = sshll.u32 %s666_s2, 4  ;;  %s373_s22 = int_to_ptr.vmem [resolvable:$true] %s372_s22 }
  0x39   :  { %498 = vmatpush3.bf16.xpose.msra.mxu0 %v551_v0  ;;  %537 = vmatpush3.bf16.xpose.msra.mxu1 %v551_v0  ;;  %v560_v4 = vld [vmem:[#allocation2 + $0x20] sm:$0xff]   ;;  %v556_v7 = vld [vmem:[#allocation5 + $0x28] sm:$0xff]   ;;  %v557_v8 = vld [vmem:[#allocation5 + $0x30] sm:$0xff]   ;;  %s633_s23 = scalar_lea.vmem %s373_s22, 1024  ;;  %p638_p11 = scmp.lt.s32.totalorder %s373_s22, %s373_s22 }
  0x3a   :  { %499 = vmatprep.subr.bf16.mxu0 %v552_v1  ;;  %530 = vmatprep.subr.bf16.mxu1 %v552_v1  ;;  %v555_v6 = vld [vmem:[#allocation5 + $0x20] sm:$0xff]   ;;  %v558_v9 = vld [vmem:[#allocation5 + $0x38] sm:$0xff]   ;;  %v561_v10 = vld [vmem:[#allocation2 + $0x8] sm:$0xff]   ;;  %p634_p10 = scmp.ne.s32.totalorder %s373_s22, %s633_s23  ;;  %p639_p12 = scmp.lt.s32.totalorder %s633_s23, %s633_s23 }
  0x3b   :  { %513 = vmatprep.mubr.bf16.mxu0 %v559_v3  ;;  %521 = vmatprep.mubr.bf16.mxu1 %v560_v4  ;;  %v562_v11 = vld [vmem:[#allocation2 + $0x28] sm:$0xff]   ;;  %v563_v12 = vld [vmem:[#allocation2 + $0x10] sm:$0xff]   ;;  %v565_v14 = vld [vmem:[#allocation2 + $0x18] sm:$0xff]  }
  0x3c   :  { %v564_v13 = vld [vmem:[#allocation2 + $0x30] sm:$0xff]   ;;  %v566_v15 = vld [vmem:[#allocation2 + $0x38] sm:$0xff]   ;;  %v385_v17 = vld [vmem:[#allocation7] ss:$0 sm:$0xff]  ;;  %p640_p13 = por %p639_p12, %p638_p11 }
  0x3e   :  { %p641_p0 = pnand %p640_p13, %p634_p10 }
  0x41   :  { %500 = vmatpush3.bf16.xpose.msra.mxu0 %v552_v1  ;;  %538 = vmatpush3.bf16.xpose.msra.mxu1 %v552_v1 }
  0x42   :  { %501 = vmatprep.subr.bf16.mxu0 %v553_v2  ;;  %531 = vmatprep.subr.bf16.mxu1 %v553_v2 }
  0x49   :  { %502 = vmatpush3.bf16.xpose.msra.mxu0 %v553_v2  ;;  %539 = vmatpush3.bf16.xpose.msra.mxu1 %v553_v2 }
  0x4a   :  { %503 = vmatprep.subr.bf16.mxu0 %v554_v5  ;;  %532 = vmatprep.subr.bf16.mxu1 %v554_v5 }
  0x51   :  { %504 = vmatpush3.bf16.xpose.msra.mxu0 %v554_v5  ;;  %540 = vmatpush3.bf16.xpose.msra.mxu1 %v554_v5 }
  0x52   :  { %505 = vmatprep.subr.bf16.mxu0 %v555_v6  ;;  %533 = vmatprep.subr.bf16.mxu1 %v555_v6 }
  0x59   :  { %506 = vmatpush3.bf16.xpose.msra.mxu0 %v555_v6  ;;  %541 = vmatpush3.bf16.xpose.msra.mxu1 %v555_v6 }
  0x5a   :  { %507 = vmatprep.subr.bf16.mxu0 %v556_v7  ;;  %534 = vmatprep.subr.bf16.mxu1 %v556_v7 }
  0x61   :  { %508 = vmatpush3.bf16.xpose.msra.mxu0 %v556_v7  ;;  %542 = vmatpush3.bf16.xpose.msra.mxu1 %v556_v7 }
  0x62   :  { %509 = vmatprep.subr.bf16.mxu0 %v557_v8  ;;  %535 = vmatprep.subr.bf16.mxu1 %v557_v8 }
  0x69   :  { %510 = vmatpush3.bf16.xpose.msra.mxu0 %v557_v8  ;;  %543 = vmatpush3.bf16.xpose.msra.mxu1 %v557_v8 }
  0x6a   :  { %511 = vmatprep.subr.bf16.mxu0 %v558_v9  ;;  %536 = vmatprep.subr.bf16.mxu1 %v558_v9 }
  0x71   :  { %512 = vmatpush3.bf16.xpose.msra.mxu0 %v558_v9  ;;  %544 = vmatpush3.bf16.xpose.msra.mxu1 %v558_v9 }
  0x78   :  { %514 = vmatmul.mubr.bf16.vlgmr.msra.gmra.mrb[0].mxu0 %v561_v10  ;;  %522 = vmatmul.mubr.bf16.vlgmr.msra.gmra.mrb[0].mxu1 %v562_v11 }
  0x79   :  { %517 = vmatprep.mubr.bf16.mxu0 %v563_v12  ;;  %525 = vmatprep.mubr.bf16.mxu1 %v564_v13 }
  0x80   :  { %518 = vmatmul.mubr.bf16.gmra.mrb[4].mxu0 %v565_v14  ;;  %526 = vmatmul.mubr.bf16.gmra.mrb[4].mxu1 %v566_v15 }
 0x14b   :  { %v515_v16 = vpop.f32.mrb[0].mxu0  ;;  %v523_v18 = vpop.f32.mrb[0].mxu1 }
 0x14c   :  { %v224_v19 = vpop.f32.mrb[1].mxu0  ;;  %v256_v20 = vpop.f32.mrb[1].mxu1  ;;  %v233_v23 = vadd.f32 %v515_v16, %v385_v17  ;;  %v265_v24 = vadd.f32 %v523_v18, %v385_v17 }
 0x14d   :  { %v516_v21 = vpop.f32.mrb[2].mxu0  ;;  %v524_v22 = vpop.f32.mrb[2].mxu1  ;;  %v225_v29 = vadd.f32 %v385_v17, %v224_v19  ;;  %v257_v30 = vadd.f32 %v385_v17, %v256_v20 }
 0x14e   :  { %v236_v25 = vadd.f32 %v516_v21, %v385_v17  ;;  %v268_v26 = vadd.f32 %v524_v22, %v385_v17  ;;  %v227_v27 = vpop.f32.mrb[3].mxu0  ;;  %v259_v28 = vpop.f32.mrb[3].mxu1 }
 0x14f   :  { %v228_v31 = vadd.f32 %v385_v17, %v227_v27  ;;  %v260_v32 = vadd.f32 %v385_v17, %v259_v28 }
 0x150   :  { %v442_v33 = vpack.c.bf16 %v236_v25, %v233_v23  ;;  %v462_v34 = vpack.c.bf16 %v268_v26, %v265_v24 }
 0x151   :  { %v437_v35 = vpack.c.bf16 %v228_v31, %v225_v29  ;;  %v457_v36 = vpack.c.bf16 %v260_v32, %v257_v30 }
 0x152   :  { %474 = vst [vmem:[#allocation8 + $0x8] sm:$0xff] %v442_v33   ;;  %478 = vst [vmem:[#allocation8 + $0x28] sm:$0xff] %v462_v34  }
 0x153   :  { %438 = vst [vmem:[#allocation8] sm:$0xff] %v437_v35   ;;  %477 = vst [vmem:[#allocation8 + $0x20] sm:$0xff] %v457_v36   ;;  %v519_v37 = vpop.f32.mrb[4].mxu0  ;;  %v527_v38 = vpop.f32.mrb[4].mxu1 }
 0x154   :  { %v240_v39 = vpop.f32.mrb[5].mxu0  ;;  %v272_v40 = vpop.f32.mrb[5].mxu1  ;;  %v249_v43 = vadd.f32 %v519_v37, %v385_v17  ;;  %v281_v44 = vadd.f32 %v527_v38, %v385_v17 }
 0x155   :  { %v520_v41 = vpop.f32.mrb[6].mxu0  ;;  %v528_v42 = vpop.f32.mrb[6].mxu1  ;;  %v241_v49 = vadd.f32 %v385_v17, %v240_v39  ;;  %v273_v50 = vadd.f32 %v385_v17, %v272_v40 }
 0x156   :  { %v252_v45 = vadd.f32 %v520_v41, %v385_v17  ;;  %v284_v46 = vadd.f32 %v528_v42, %v385_v17  ;;  %v243_v47 = vpop.f32.mrb[7].mxu0  ;;  %v275_v48 = vpop.f32.mrb[7].mxu1 }
 0x157   :  { %v244_v51 = vadd.f32 %v385_v17, %v243_v47  ;;  %v276_v52 = vadd.f32 %v385_v17, %v275_v48 }
 0x158   :  { %v452_v53 = vpack.c.bf16 %v252_v45, %v249_v43  ;;  %v472_v54 = vpack.c.bf16 %v284_v46, %v281_v44 }
 0x159   :  { %v447_v55 = vpack.c.bf16 %v244_v51, %v241_v49  ;;  %v467_v56 = vpack.c.bf16 %v276_v52, %v273_v50 }
 0x15a   :  { %476 = vst [vmem:[#allocation8 + $0x18] sm:$0xff] %v452_v53   ;;  %480 = vst [vmem:[#allocation8 + $0x38] sm:$0xff] %v472_v54  }
 0x15b   :  { %475 = vst [vmem:[#allocation8 + $0x10] sm:$0xff] %v447_v55   ;;  %479 = vst [vmem:[#allocation8 + $0x30] sm:$0xff] %v467_v56  }
 0x15c   :  { %644 = shalt.err (!%p641_p0)
}
 0x15d   :  { %s645_s28 = scalar_lea.hbm %s754_s3, 1024 }
 0x15e   :  { %p646_p1 = scmp.ne.s32.totalorder %s754_s3, %s645_s28  ;;  %p649_p2 = scmp.lt.u32.totalorder %s645_s28, %s754_s3 }
 0x160   :  { %p651_p3 = pnand %p649_p2, %p646_p1 }
 0x162   :  { %654 = shalt.err (!%p651_p3)
}
 0x163   :  { %378 = dma.vmem_to_hbm [thread:$0]  %s373_s22, 1024, %s754_s3, [#allocation4], %s663_s24, %s663_s24, %s664_s25  }
 0x164   :  { %659 = dma.done.wait [#allocation4], 1024  }
 0x165   :  { %660 = vsyncadd [#allocation4], 4294966272 }
 0x166   :  { %382 = vsyncpa [#allocation3], 1 }
 0x167   :  { %383 = vsyncpa [#allocation6], 1 }
 0x168   :  { %384 = vsyncpa [#allocation4], 1 }

</bundles_post_ra>
